<compile_context>
chip_gen: v7x
topology: tpu7x:2x2x1
jax: 0.10.0
libtpu: 0.0.40
codegen_flags: <defaults>
</compile_context>

<pallas_src>
import functools

import jax
import jax.numpy as jnp
from jax.experimental import pallas as pl
from jax.experimental.pallas import tpu as pltpu


def _make_mlp_kernel(compute_dtype):
    def _mlp_kernel(x_ref, w1_ref, b1_ref, w2_ref, b2_ref, o_ref):
        # x_ref : (TM, J*d)   w1_ref : (J*d, d)   b1_ref : (1, d) f32
        # w2_ref: (d, d)      b2_ref : (1, d) f32 o_ref  : (TM, d)
        x = x_ref[...]
        if compute_dtype is not None:
            x = x.astype(compute_dtype)          # in-kernel cast: no HBM pass
        h = jnp.dot(x, w1_ref[...], preferred_element_type=jnp.float32)
        h = h + b1_ref[...]                      # f32 epilogue
        h = jnp.maximum(h, 0.0)                  # ReLU
        y = jnp.dot(h.astype(w2_ref.dtype), w2_ref[...],
                    preferred_element_type=jnp.float32)
        y = y + b2_ref[...]
        o_ref[...] = y.astype(o_ref.dtype)
    return _mlp_kernel


def joint_to_person_forward(joint_feats, params, N, J, d,
                            tm=8192, compute_dtype=None):
    """joint_feats: (B, N, J, d)  ->  (B, N, d)   (dtype preserved)

    tm:            max rows of B*N processed per grid step.
    compute_dtype: optional matmul-input dtype (e.g. jnp.bfloat16 on v6e/v7x).
                   x is cast in-kernel; accumulation and bias add stay f32.
                   Leave None on v5e (no bf16 VPU; kernel is HBM-bound anyway).
    """
    B = joint_feats.shape[0]
    R = B * N
    Jd = J * d

    # glue: view(-1, N, J, d).flatten(2, 3) == reshape to (B*N, J*d); no cast.
    x2d = joint_feats.reshape(R, Jd)
    out_dtype = joint_feats.dtype

    w1, b1, w2, b2 = params
    if compute_dtype is not None:
        w1 = w1.astype(compute_dtype)            # weights are tiny; cast once
        w2 = w2.astype(compute_dtype)
    b1 = b1.astype(jnp.float32).reshape(1, d)    # biases stay f32
    b2 = b2.astype(jnp.float32).reshape(1, d)

    # dtype-aware sublane multiple for the streamed x tile.
    sub = {4: 8, 2: 16, 1: 32}.get(jnp.dtype(x2d.dtype).itemsize, 8)

    TM = min(tm, R)
    if R > 2 * sub:
        # Keep >= 2 grid steps when the row count allows it (v7x megacore split
        # + DMA/compute overlap); ~ceil(R/2) rounded up to a sublane multiple.
        half = (((R + 1) // 2) + sub - 1) // sub * sub
        TM = min(TM, half)
    if TM < R:
        TM = max(sub, (TM // sub) * sub)         # partial blocks need sub-mult

    grid = (pl.cdiv(R, TM),)                     # last block masked by Pallas

    x_item = jnp.dtype(x2d.dtype).itemsize
    o_item = jnp.dtype(out_dtype).itemsize
    w_item = jnp.dtype(w1.dtype).itemsize
    flops = 2 * R * (Jd * d + d * d)
    bytes_accessed = (R * Jd * x_item + R * d * o_item
                      + (Jd * d + d * d) * w_item + 2 * d * 4)

    out2d = pl.pallas_call(
        _make_mlp_kernel(compute_dtype),
        out_shape=jax.ShapeDtypeStruct((R, d), out_dtype),
        grid=grid,
        in_specs=[
            # activation stream: one (TM, J*d) tile per grid step
            pl.BlockSpec((TM, Jd), lambda i: (i, 0)),
            # weights/biases: constant index_map -> VMEM-resident, DMA'd once
            pl.BlockSpec((Jd, d), lambda i: (0, 0)),   # w1
            pl.BlockSpec((1, d), lambda i: (0, 0)),    # b1 (f32)
            pl.BlockSpec((d, d), lambda i: (0, 0)),    # w2
            pl.BlockSpec((1, d), lambda i: (0, 0)),    # b2 (f32)
        ],
        out_specs=pl.BlockSpec((TM, d), lambda i: (i, 0)),
        compiler_params=pltpu.CompilerParams(
            dimension_semantics=("parallel",)),
        cost_estimate=pl.CostEstimate(
            flops=flops, transcendentals=0, bytes_accessed=bytes_accessed),
    )(x2d, w1, b1, w2, b2)

    return out2d.reshape(B, N, d)


def init_params(key, J, d, dtype=jnp.float32):
    """Deterministic xavier-uniform-style init matching nn.Linear shapes."""
    k1, k2 = jax.random.split(key)
    in1 = J * d
    lim1 = (6.0 / (in1 + d)) ** 0.5
    lim2 = (6.0 / (d + d)) ** 0.5
    w1 = jax.random.uniform(k1, (in1, d), dtype, minval=-lim1, maxval=lim1)
    b1 = jnp.zeros((1, d), dtype)
    w2 = jax.random.uniform(k2, (d, d), dtype, minval=-lim2, maxval=lim2)
    b2 = jnp.zeros((1, d), dtype)
    return (w1, b1, w2, b2)


def _reference(joint_feats, params, N, J, d):
    w1, b1, w2, b2 = params
    B = joint_feats.shape[0]
    x2d = joint_feats.reshape(B * N, J * d).astype(jnp.float32)
    y = jnp.maximum(x2d @ w1.astype(jnp.float32) + b1, 0.0)
    y = y @ w2.astype(jnp.float32) + b2
    return y.reshape(B, N, d)


if __name__ == "__main__":
    key = jax.random.PRNGKey(0)
    B, N, J, d = 2, 4, 4, 32          # small shapes; J*d = 128 (lane-aligned)

    kx, kp, kx2 = jax.random.split(key, 3)
    joint_feats = jax.random.normal(kx, (B, N, J, d), jnp.float32)
    params = init_params(kp, J, d)

    # f32 path (tight check against pure-JAX reference)
    out = joint_to_person_forward(joint_feats, params, N, J, d)
    out = jax.block_until_ready(out)
    ref = _reference(joint_feats, params, N, J, d)
    assert out.shape == (B, N, d)
    assert out.dtype == joint_feats.dtype
    assert jnp.allclose(out, ref, atol=1e-5, rtol=1e-5)

    # bf16 compute path (in-kernel cast; output stays f32), looser tolerance
    out_bf16 = joint_to_person_forward(joint_feats, params, N, J, d,
                                       compute_dtype=jnp.bfloat16)
    out_bf16 = jax.block_until_ready(out_bf16)
    assert out_bf16.shape == (B, N, d)
    assert out_bf16.dtype == joint_feats.dtype   # dtype preserved
    assert jnp.allclose(out_bf16, ref, atol=0.15, rtol=0.15)

    # partial-last-block path (R not a multiple of TM; exercises Pallas masking)
    B2, N2 = 3, 7                                # R = 21, tm=8 -> grid of 3
    joint_feats2 = jax.random.normal(kx2, (B2, N2, J, d), jnp.float32)
    out_tail = joint_to_person_forward(joint_feats2, params, N2, J, d, tm=8)
    out_tail = jax.block_until_ready(out_tail)
    ref_tail = _reference(joint_feats2, params, N2, J, d)
    assert out_tail.shape == (B2, N2, d)
    assert jnp.allclose(out_tail, ref_tail, atol=1e-5, rtol=1e-5)

    print("KERNEL_OK")
</pallas_src>

<mosaic_0001>
module attributes {stable_mosaic.version = 11 : i64} {
  func.func @_mlp_kernel(%arg0: i32, %arg1: memref<8x128xf32, #tpu.memory_space<vmem>>, %arg2: memref<128x32xf32, #tpu.memory_space<vmem>>, %arg3: memref<1x32xf32, #tpu.memory_space<vmem>>, %arg4: memref<32x32xf32, #tpu.memory_space<vmem>>, %arg5: memref<1x32xf32, #tpu.memory_space<vmem>>, %arg6: memref<8x32xf32, #tpu.memory_space<vmem>>) attributes {dimension_semantics = [#tpu.dimension_semantics<parallel>], iteration_bounds = array<i64: 1>, scalar_prefetch = 0 : i64, scratch_operands = 0 : i64, tpu.core_type = #tpu.core_type<tc>, window_params = [{transform_indices = @transform_0, window_bounds = array<i64: 8, 128>}, {pipeline_mode = #tpu.pipeline_mode<synchronous>, transform_indices = @transform_1, window_bounds = array<i64: 128, 32>}, {pipeline_mode = #tpu.pipeline_mode<synchronous>, transform_indices = @transform_2, window_bounds = array<i64: 1, 32>}, {pipeline_mode = #tpu.pipeline_mode<synchronous>, transform_indices = @transform_3, window_bounds = array<i64: 32, 32>}, {pipeline_mode = #tpu.pipeline_mode<synchronous>, transform_indices = @transform_4, window_bounds = array<i64: 1, 32>}, {transform_indices = @transform_5, window_bounds = array<i64: 8, 32>}]} {
    %c0 = arith.constant 0 : index
    %c0_0 = arith.constant 0 : index
    %0 = vector.load %arg1[%c0, %c0_0] : memref<8x128xf32, #tpu.memory_space<vmem>>, vector<8x128xf32>
    %c0_1 = arith.constant 0 : index
    %c0_2 = arith.constant 0 : index
    %1 = vector.load %arg2[%c0_1, %c0_2] : memref<128x32xf32, #tpu.memory_space<vmem>>, vector<128x32xf32>
    %cst = arith.constant dense<0.000000e+00> : vector<8x32xf32>
    %2 = tpu.matmul %0, %1, %cst {dimension_numbers = #tpu.dot_dimension_numbers<[1], [0], [0], [1], [0, 0, 1, 1], [], []>} : vector<8x128xf32>, vector<128x32xf32>, vector<8x32xf32> -> vector<8x32xf32>
    %c0_3 = arith.constant 0 : index
    %c0_4 = arith.constant 0 : index
    %3 = vector.load %arg3[%c0_3, %c0_4] : memref<1x32xf32, #tpu.memory_space<vmem>>, vector<1x32xf32>
    %4 = vector.broadcast %3 : vector<1x32xf32> to vector<8x32xf32>
    %5 = arith.addf %2, %4 : vector<8x32xf32>
    %cst_5 = arith.constant 0.000000e+00 : f32
    %6 = vector.broadcast %cst_5 : f32 to vector<8x32xf32>
    %7 = arith.maximumf %5, %6 : vector<8x32xf32>
    %c0_6 = arith.constant 0 : index
    %c0_7 = arith.constant 0 : index
    %8 = vector.load %arg4[%c0_6, %c0_7] : memref<32x32xf32, #tpu.memory_space<vmem>>, vector<32x32xf32>
    %cst_8 = arith.constant dense<0.000000e+00> : vector<8x32xf32>
    %9 = tpu.matmul %7, %8, %cst_8 {dimension_numbers = #tpu.dot_dimension_numbers<[1], [0], [0], [1], [0, 0, 1, 1], [], []>} : vector<8x32xf32>, vector<32x32xf32>, vector<8x32xf32> -> vector<8x32xf32>
    %c0_9 = arith.constant 0 : index
    %c0_10 = arith.constant 0 : index
    %10 = vector.load %arg5[%c0_9, %c0_10] : memref<1x32xf32, #tpu.memory_space<vmem>>, vector<1x32xf32>
    %11 = vector.broadcast %10 : vector<1x32xf32> to vector<8x32xf32>
    %12 = arith.addf %9, %11 : vector<8x32xf32>
    %c0_11 = arith.constant 0 : index
    %c0_12 = arith.constant 0 : index
    %13 = vector.load %arg6[%c0_11, %c0_12] : memref<8x32xf32, #tpu.memory_space<vmem>>, vector<8x32xf32>
    tpu.vector_store %arg6[%c0_11, %c0_12], %12 {strides = array<i32>} : memref<8x32xf32, #tpu.memory_space<vmem>>, vector<8x32xf32>,
    return
  }
  func.func @transform_0(%arg0: i32) -> (i32, i32) {
    %c0_i32 = arith.constant 0 : i32
    %c0_i32_0 = arith.constant 0 : i32
    return %arg0, %c0_i32 : i32, i32
  }
  func.func @transform_1(%arg0: i32) -> (i32, i32) {
    %c0_i32 = arith.constant 0 : i32
    %c0_i32_0 = arith.constant 0 : i32
    %c0_i32_1 = arith.constant 0 : i32
    return %c0_i32, %c0_i32_0 : i32, i32
  }
  func.func @transform_2(%arg0: i32) -> (i32, i32) {
    %c0_i32 = arith.constant 0 : i32
    %c0_i32_0 = arith.constant 0 : i32
    %c0_i32_1 = arith.constant 0 : i32
    return %c0_i32, %c0_i32_0 : i32, i32
  }
  func.func @transform_3(%arg0: i32) -> (i32, i32) {
    %c0_i32 = arith.constant 0 : i32
    %c0_i32_0 = arith.constant 0 : i32
    %c0_i32_1 = arith.constant 0 : i32
    return %c0_i32, %c0_i32_0 : i32, i32
  }
  func.func @transform_4(%arg0: i32) -> (i32, i32) {
    %c0_i32 = arith.constant 0 : i32
    %c0_i32_0 = arith.constant 0 : i32
    %c0_i32_1 = arith.constant 0 : i32
    return %c0_i32, %c0_i32_0 : i32, i32
  }
  func.func @transform_5(%arg0: i32) -> (i32, i32) {
    %c0_i32 = arith.constant 0 : i32
    %c0_i32_0 = arith.constant 0 : i32
    return %arg0, %c0_i32 : i32, i32
  }
}

</mosaic_0001>

<bundles_post_ra>
// kernel: tpu_custom_call.1
= control target key start
LH: loop header
LB: loop body
LE: loop exit
PB: predicated region body
PF: predicated region fallthrough
CT: control target
= control target key end

     0   :  { %v345_v3 = vmov 0.0|0.0   ;;  %vm346_vm0 = vmmov 0   ;;  %v347_v6 = vmov 0.0   ;;  %s460_s0 = inlined_call_operand.vmem [shape: f32[8,128], index: 0, kind: input, shape index: {}]   ;;  %s461_s1 = inlined_call_operand.vmem [shape: f32[128,32], index: 1, kind: input, shape index: {}]   ;;  %s462_s2 = inlined_call_operand.vmem [shape: f32[1,32], index: 2, kind: input, shape index: {}]   ;;  %s463_s3 = inlined_call_operand.vmem [shape: f32[32,32], index: 3, kind: input, shape index: {}]   ;;  %s464_s4 = inlined_call_operand.vmem [shape: f32[1,32], index: 4, kind: input, shape index: {}]   ;;  %s465_s5 = inlined_call_operand.hbm [shape: f32[8,32], index: 5, kind: output, shape index: {}]  }
   0x1   :  { %v22_v0 = vld [vmem:[%s461_s1] sm:$0xff]  ;;  %v23_v1 = vld [vmem:[%s461_s1 + $0x8] sm:$0xff]  ;;  %v24_v2 = vld [vmem:[%s461_s1 + $0x10] sm:$0xff]  ;;  %287 = vmatprep.subr.bf16.mxu0 %v345_v3  ;;  %273 = vmatprep.mubr.msk.f32.mxu0 %vm346_vm0, %v347_v6 }
   0x2   :  { %v288_v4 = vpack.c.bf16 %v23_v1, %v22_v0  ;;  %v25_v5 = vld [vmem:[%s461_s1 + $0x18] sm:$0xff]  ;;  %311 = vmatprep.subr.bf16.mxu1 %v345_v3  ;;  %284 = vmatprep.mubr.msk.f32.mxu1 %vm346_vm0, %v347_v6  ;;  %v26_v8 = vld [vmem:[%s461_s1 + $0x20] sm:$0xff]  ;;  %v27_v9 = vld [vmem:[%s461_s1 + $0x28] sm:$0xff] }
   0x3   :  { %v291_v7 = vpack.c.bf16 %v25_v5, %v24_v2  ;;  %v116_v10 = vld [vmem:[%s463_s3] sm:$0xff]  ;;  %v117_v11 = vld [vmem:[%s463_s3 + $0x8] sm:$0xff] }
   0x4   :  { %289 = vmatpush3.bf16.msra.mxu0 %v288_v4 }
   0x5   :  { %290 = vmatprep.subr.bf16.mxu0 %v345_v3 }
   0x6   :  { %10 = vsyncpa [#allocation3], 0  ;;  %v294_v12 = vpack.c.bf16 %v27_v9, %v26_v8  ;;  %v312_v13 = vpack.c.bf16 %v117_v11, %v116_v10  ;;  %v28_v14 = vld [vmem:[%s461_s1 + $0x30] sm:$0xff]  ;;  %v29_v15 = vld [vmem:[%s461_s1 + $0x38] sm:$0xff]  ;;  %vm127_vm1 = vcmask 261120   ;;  %s348_s12 = smov [#allocation2]  }
   0x7   :  { %v297_v16 = vpack.c.bf16 %v29_v15, %v28_v14  ;;  %v30_v17 = vld [vmem:[%s461_s1 + $0x40] sm:$0xff]  ;;  %v31_v18 = vld [vmem:[%s461_s1 + $0x48] sm:$0xff]  ;;  %v32_v20 = vld [vmem:[%s461_s1 + $0x50] sm:$0xff]  ;;  %s208_s13 = sshll.u32 %s348_s12, 4  ;;  %s209_s13 = int_to_ptr.vmem [resolvable:$true] %s208_s13 }
   0x8   :  { %292 = vmatpush3.bf16.msra.mxu0 %v291_v7  ;;  %313 = vmatpush3.bf16.msra.mxu1 %v312_v13  ;;  %v300_v19 = vpack.c.bf16 %v31_v18, %v30_v17  ;;  %v33_v21 = vld [vmem:[%s461_s1 + $0x58] sm:$0xff]  ;;  %v34_v23 = vld [vmem:[%s461_s1 + $0x60] sm:$0xff]  ;;  %v35_v24 = vld [vmem:[%s461_s1 + $0x68] sm:$0xff]  ;;  %p326_p1 = scmp.lt.s32.totalorder %s209_s13, %s209_s13 }
   0x9   :  { %293 = vmatprep.subr.bf16.mxu0 %v345_v3  ;;  %314 = vmatprep.subr.bf16.mxu1 %v345_v3  ;;  %v303_v22 = vpack.c.bf16 %v33_v21, %v32_v20  ;;  %v306_v25 = vpack.c.bf16 %v35_v24, %v34_v23  ;;  %v36_v26 = vld [vmem:[%s461_s1 + $0x70] sm:$0xff]  ;;  %v37_v27 = vld [vmem:[%s461_s1 + $0x78] sm:$0xff]  ;;  %v21_v29 = vld [vmem:[%s460_s0] sm:$0xff] }
   0xa   :  { %v309_v28 = vpack.c.bf16 %v37_v27, %v36_v26  ;;  %v118_v30 = vld [vmem:[%s463_s3 + $0x10] sm:$0xff]  ;;  %v119_v31 = vld [vmem:[%s463_s3 + $0x18] sm:$0xff]  ;;  %v216_v33 = vld [vmem:[%s462_s2] ss:$0 sm:$0xff]  ;;  %s321_s3 = scalar_lea.vmem %s209_s13, 128 }
   0xb   :  { %v315_v32 = vpack.c.bf16 %v119_v31, %v118_v30  ;;  %v217_v38 = vld [vmem:[%s464_s4] ss:$0 sm:$0xff]  ;;  %p322_p0 = scmp.ne.s32.totalorder %s209_s13, %s321_s3  ;;  %p327_p2 = scmp.lt.s32.totalorder %s321_s3, %s321_s3 }
   0xc   :  { %295 = vmatpush3.bf16.msra.mxu0 %v294_v12 }
   0xd   :  { %296 = vmatprep.subr.bf16.mxu0 %v345_v3  ;;  %316 = vmatpush3.bf16.msra.mxu1 %v315_v32  ;;  %p328_p3 = por %p327_p2, %p326_p1 }
   0xf   :  { %p329_p4 = pnand %p328_p3, %p322_p0 }
  0x10   :  { %298 = vmatpush3.bf16.msra.mxu0 %v297_v16 }
  0x11   :  { %299 = vmatprep.subr.bf16.mxu0 %v345_v3 }
  0x14   :  { %301 = vmatpush3.bf16.msra.mxu0 %v300_v19 }
  0x15   :  { %302 = vmatprep.subr.bf16.mxu0 %v345_v3 }
  0x18   :  { %304 = vmatpush3.bf16.msra.mxu0 %v303_v22 }
  0x19   :  { %305 = vmatprep.subr.bf16.mxu0 %v345_v3 }
  0x1c   :  { %307 = vmatpush3.bf16.msra.mxu0 %v306_v25 }
  0x1d   :  { %308 = vmatprep.subr.bf16.mxu0 %v345_v3 }
  0x20   :  { %310 = vmatpush3.bf16.msra.mxu0 %v309_v28 }
  0x23   :  { %274 = vmatmul.mubr.f32.vlgmr.msra.gmra.mrb[0].mxu0 %v21_v29 }
  0xf6   :  { %v111_v34 = vpop.f32.mrb[0].mxu0 }
  0xf7   :  { %v112_v35 = vadd.f32 %v216_v33, %v111_v34  ;;  %v275_v36 = vpop.f32.mrb[1].mxu0 }
  0xf9   :  { %v115_v37 = vmax.f32 %v112_v35, 0.0 }
  0xfb   :  { %285 = vmatmul.mubr.msk.f32.vlgmr.msra.gmra.mrb[0].mxu1 %vm127_vm1, %v115_v37 }
 0x1ce   :  { %v197_v39 = vpop.f32.mrb[0].mxu1 }
 0x1cf   :  { %v198_v40 = vadd.f32 %v217_v38, %v197_v39  ;;  %v286_v41 = vpop.f32.mrb[1].mxu1 }
 0x1d1   :  { %201 = vst.msk [vmem:[#allocation2] sm:$0xff] %vm127_vm1, %v198_v40 }
 0x1d2   :  { %332 = shalt.err (!%p329_p4)
}
 0x1d3   :  { %s333_s15 = scalar_lea.hbm %s465_s5, 128 }
 0x1d4   :  { %p334_p5 = scmp.ne.s32.totalorder %s465_s5, %s333_s15  ;;  %p337_p6 = scmp.lt.u32.totalorder %s333_s15, %s465_s5 }
 0x1d6   :  { %p339_p7 = pnand %p337_p6, %p334_p5 }
 0x1d8   :  { %342 = shalt.err (!%p339_p7)
}
 0x1d9   :  { %211 = dma.vmem_to_hbm [thread:$0]  %s209_s13, 128, %s465_s5, [#allocation3]  }
 0x1da   :  { %343 = dma.done.wait [#allocation3], 128  }
 0x1db   :  { %344 = vsyncadd [#allocation3], 4294967168 }
 0x1dc   :  { %215 = vsyncpa [#allocation3], 1 }

</bundles_post_ra>
